<compile_context>
chip_gen: v7x
topology: tpu7x:2x2x1
jax: 0.10.0
libtpu: 0.0.40
codegen_flags: <defaults>
</compile_context>

<pallas_src>
import functools

import jax
import jax.numpy as jnp
from jax.experimental import pallas as pl
from jax.experimental.pallas import tpu as pltpu


# ----------------------------- example transforms -----------------------------
# Each transform is a pure function array -> array (same shape), traced *inside*
# the Pallas kernel body so the whole chain is fused on-chip.  Scalars are plain
# Python floats (weakly typed) so no per-transform casts are emitted.

def make_gain(gain):
    gain = float(gain)

    def t(x):
        return x * gain                      # VPU, pure slack in mem-bound regime

    return t


def make_bias(bias):
    bias = float(bias)

    def t(x):
        return x + bias                      # VPU

    return t


def make_time_shift(shift):
    shift = int(shift)

    def t(x):
        # Circular shift along the last (time) axis.  pltpu.roll is a single
        # XLU lane rotate (free VLIW slot here); it requires a non-negative
        # axis index, so pass x.ndim - 1 rather than -1.
        return pltpu.roll(x, shift=shift, axis=x.ndim - 1)

    return t


def tanh_squash(x):
    return jnp.tanh(x)                       # EUP transcendental -> separate slot


# --------------------------------- Compose ------------------------------------

class Compose:
    """JAX/Pallas equivalent of the PyTorch Compose module (fused transform chain)."""

    _MIN_GRID_STEPS = 4        # keep both v7x TensorCores busy + give the
                               # double-buffer pipeline something to overlap

    def __init__(self, transforms, *, in_place=False):
        self.transforms = tuple(transforms)
        self.in_place = bool(in_place)

    # ----------------------------- VMEM budgeting -----------------------------
    @staticmethod
    def _vmem_capacity_bytes():
        # Per-TensorCore physical VMEM: 128 MiB on v5e/v6e, 64 MiB on v7x.
        try:
            cap = int(getattr(pltpu.get_tpu_info(), "vmem_capacity_bytes", 0))
        except Exception:
            cap = 0
        return cap if cap > 0 else 64 * 1024 * 1024   # conservative (v7x) fallback

    @staticmethod
    def _sublane_multiple(itemsize):
        # f32 -> 8, bf16 -> 16, int8/fp8 -> 32 (packed sublane layouts).
        return max(8, 32 // max(1, int(itemsize)))

    def _plan(self, rows, w, io_itemsize, compute_itemsize):
        cap = self._vmem_capacity_bytes()
        # Total on-chip footprint budget for one grid step (buffers + temps).
        tile_budget = min(cap // 2, 64 * 1024 * 1024)
        vmem_limit = min((cap * 3) // 4, 100 * 1024 * 1024)

        sub = self._sublane_multiple(io_itemsize)
        # Per-row footprint: 2x in + 2x out double buffers (I/O dtype) plus
        # ~2 full-strip temporaries in the compute dtype (roll / tanh chain).
        bytes_per_row = w * (4 * io_itemsize + 2 * compute_itemsize)

        min_footprint = sub * bytes_per_row
        if min_footprint > tile_budget:
            # W must stay whole: the circular time shift is global over time.
            # TODO(synk): chunk the time axis with halo handling if even a
            # minimal (sub, W) strip ever exceeds physical VMEM.
            tile_budget = min_footprint
            vmem_limit = min(cap, (min_footprint * 5) // 4)

        budget_rows = max(sub, tile_budget // max(1, bytes_per_row))
        # Cap the strip so the grid has >= _MIN_GRID_STEPS iterations.
        steps_cap = max(sub, (pl.cdiv(rows, self._MIN_GRID_STEPS) // sub) * sub)
        tr = min(budget_rows, steps_cap)
        if tr >= rows:
            tr = rows            # full array dim -> no (8,128) constraint
        else:
            tr = max(sub, (tr // sub) * sub)
        return tr, int(vmem_limit)

    # --------------------------------- call -----------------------------------
    @functools.partial(jax.jit, static_argnums=0)
    def __call__(self, data):
        shape, dtype = data.shape, data.dtype
        w = shape[-1]
        x2 = data.reshape(-1, w)             # [B*C*H, W]; time stays on the lane axis
        rows = x2.shape[0]

        # Compute natively in the I/O dtype for f32/bf16 (bf16 VPU/EUP on
        # v6e/v7x halves vreg + temporary pressure); widen everything else.
        if dtype == jnp.float32 or dtype == jnp.bfloat16:
            compute_dtype = dtype
        else:
            compute_dtype = jnp.float32

        tr, vmem_limit = self._plan(
            rows, w, dtype.itemsize, jnp.dtype(compute_dtype).itemsize)
        grid = (pl.cdiv(rows, tr),)
        transforms = self.transforms

        def kernel(x_ref, o_ref):
            x = x_ref[...].astype(compute_dtype)   # no-op when dtypes match
            for aug in transforms:                 # fused on-chip composition
                x = aug(x)
            o_ref[...] = x.astype(o_ref.dtype)

        out2 = pl.pallas_call(
            kernel,
            out_shape=jax.ShapeDtypeStruct((rows, w), dtype),
            grid=grid,
            # Tile only the leading (row) axis; the FULL time axis W lives inside
            # every block so the circular time shift is applied globally and never
            # to a partial-W tile.
            # NOTE: W not a multiple of 128 still runs correctly (masked stores),
            # but it cannot be padded in the wrapper without breaking the
            # circular-shift semantics of the transform chain.
            in_specs=[pl.BlockSpec((tr, w), lambda i: (i, 0))],
            out_specs=pl.BlockSpec((tr, w), lambda i: (i, 0)),
            compiler_params=pltpu.CompilerParams(
                dimension_semantics=("parallel",),   # shard row grid across TCs
                vmem_limit_bytes=vmem_limit,
            ),
            # Alias input/output when the caller donates `data` (in-place aug).
            input_output_aliases={0: 0} if self.in_place else {},
        )(x2)
        return out2.reshape(shape)


# ---------------------------------- main ---------------------------------------

if __name__ == "__main__":
    key = jax.random.PRNGKey(0)
    # [B, C, H, W] = [batch, channels, freq, time]; time = 128 keeps the lane
    # (last) axis dense so output stores are full-width (no vst.msk).
    x = jax.random.normal(key, (2, 4, 16, 128), dtype=jnp.float32)

    transforms = [
        make_gain(1.5),
        make_bias(0.25),
        make_time_shift(3),
        tanh_squash,
    ]

    compose = Compose(transforms)
    out = jax.block_until_ready(compose(x))

    # Pure-JAX reference of the exact same composition semantics.
    ref = jnp.tanh(jnp.roll(x * 1.5 + 0.25, shift=3, axis=-1))

    assert out.shape == x.shape and out.dtype == x.dtype
    assert jnp.allclose(out, ref, atol=1e-5, rtol=1e-5), "mismatch vs reference"

    print("KERNEL_OK")
</pallas_src>

<mosaic_0001>
module attributes {stable_mosaic.version = 11 : i64} {
  func.func @kernel(%arg0: i32, %arg1: memref<32x128xf32, #tpu.memory_space<vmem>>, %arg2: memref<32x128xf32, #tpu.memory_space<vmem>>) attributes {dimension_semantics = [#tpu.dimension_semantics<parallel>], iteration_bounds = array<i64: 4>, scalar_prefetch = 0 : i64, scratch_operands = 0 : i64, tpu.core_type = #tpu.core_type<tc>, window_params = [{transform_indices = @transform_0, window_bounds = array<i64: 32, 128>}, {transform_indices = @transform_1, window_bounds = array<i64: 32, 128>}]} {
    %c0 = arith.constant 0 : index
    %c0_0 = arith.constant 0 : index
    %0 = vector.load %arg1[%c0, %c0_0] : memref<32x128xf32, #tpu.memory_space<vmem>>, vector<32x128xf32>
    %cst = arith.constant 1.500000e+00 : f32
    %1 = vector.broadcast %cst : f32 to vector<32x128xf32>
    %2 = arith.mulf %0, %1 : vector<32x128xf32>
    %cst_1 = arith.constant 2.500000e-01 : f32
    %3 = vector.broadcast %cst_1 : f32 to vector<32x128xf32>
    %4 = arith.addf %2, %3 : vector<32x128xf32>
    %c3_i32 = arith.constant 3 : i32
    %5 = tpu.dynamic_rotate %4 by %c3_i32 dim 1 : vector<32x128xf32>, i32 -> vector<32x128xf32>
    %6 = math.tanh %5 : vector<32x128xf32>
    %c0_2 = arith.constant 0 : index
    %c0_3 = arith.constant 0 : index
    %7 = vector.load %arg2[%c0_2, %c0_3] : memref<32x128xf32, #tpu.memory_space<vmem>>, vector<32x128xf32>
    tpu.vector_store %arg2[%c0_2, %c0_3], %6 {strides = array<i32>} : memref<32x128xf32, #tpu.memory_space<vmem>>, vector<32x128xf32>,
    return
  }
  func.func @transform_0(%arg0: i32) -> (i32, i32) {
    %c0_i32 = arith.constant 0 : i32
    %c0_i32_0 = arith.constant 0 : i32
    return %arg0, %c0_i32 : i32, i32
  }
  func.func @transform_1(%arg0: i32) -> (i32, i32) {
    %c0_i32 = arith.constant 0 : i32
    %c0_i32_0 = arith.constant 0 : i32
    return %arg0, %c0_i32 : i32, i32
  }
}

</mosaic_0001>

<bundles_post_ra>
// kernel: a_call__.1
= control target key start
LH: loop header
LB: loop body
LE: loop exit
PB: predicated region body
PF: predicated region fallthrough
CT: control target
= control target key end

     0   :  { %6 = vsyncpa [#allocation3], 0  ;;  %s606_s0 = inlined_call_operand.hbm [shape: f32[128,128], index: 0, kind: input, shape index: {}]   ;;  %s607_s1 = inlined_call_operand.hbm [shape: f32[128,128], index: 1, kind: output, shape index: {}]  }
   0x1   :  { %8 = vsyncpa [#allocation3 + $0x1], 0 }
   0x2   :  { %9 = vsyncpa [#allocation4], 0 }
   0x3   :  { %11 = vsyncpa [#allocation4 + $0x1], 0  ;;  %s442_s6 = smov 0   ;;  %s444_s7 = smov 0  }
   0x4   :  { %s446_s8 = smov 0   ;;  %s448_s9 = smov 0  }
   0x5 LB: > { %s463_s10 = sadd.s32 4294967295, %s423_s9   ;;  %s252_s11 = sadd.s32 4294967294, %s423_s9   ;;  %s423_s9 = sphi %s448_s9, %s619_s9   ;;  %s419_s8 = sphi %s446_s8, %s618_s8   ;;  %s415_s7 = sphi %s444_s7, %s617_s7   ;;  %s411_s6 = sphi %s442_s6, %s616_s6  }
   0x6   : > { %s467_s12 = sadd.s32 1, %s423_s9   ;;  %s24_s13 = sadd.s32 1, %s419_s8 }
   0x7   : > { %s21_s14 = ssub.s32 %s423_s9, %s467_s12  ;;  %p31_p0 = scmp.ne.s32.totalorder %s419_s8, %s415_s7 }
   0x8   : > { %p22_p1 = scmp.eq.s32.totalorder %s21_s14, 0  ;;  %p32_p2 = scmp.eq.s32.totalorder %s423_s9, 0 }
   0x9   : > { %p37_p3 = scmp.ne.s32.totalorder %s415_s7, %s411_s6  ;;  %p38_p4 = scmp.eq.s32.totalorder %s463_s10, 0 }
   0xa   : > { %s479_s15 = scalar_select %p22_p1, %s419_s8, %s24_s13  }
   0xb   : > { %p481_p5 = por %p32_p2, %p31_p0  ;;  %p485_p6 = por %p38_p4, %p37_p3 }
   0xc   : > { %p61_p7 = scmp.eq.s32.totalorder %s463_s10, 3  ;;  %p67_p8 = scmp.eq.s32.totalorder %s252_s11, 3 }
   0xd   : > { %p280_p9 = scmp.lt.s32.totalorder %s423_s9, 4  ;;  %s87_s20 = sand.u32 1, %s419_s8  }
   0xe   : > { %p491_p10 = por %p61_p7, %p31_p0  ;;  %p495_p11 = por %p67_p8, %p37_p3 }
   0xf   : > { %s266_s21 = sshll.u32 %s423_s9, 9  ;;  %s255_s22 = sshll.u32 %s87_s20, 5 }
  0x10   : > { %s611_s18 = scalar_select %p491_p10, 1, 0 }
  0x11   : > { %s612_s19 = scalar_select %p495_p11, 1, 0 }
  0x12   : > { %s504_s25 = scalar_lea.hbm %s606_s0, %s266_s21  ;;  %s91_s26 = scalar_lea.vmem [#allocation2], %s255_s22 }
  0x13   : > { %s98_s27 = sshll.u32 %s91_s26, 4  ;;  %p508_p12 = pnand %p280_p9, %p481_p5  ;;  %s512_s27 = int_to_ptr.vmem [resolvable:$true] %s98_s27 }
  0x14   : > { %s514_s29 = scalar_lea.sflag [#allocation3], %s87_s20  ;;  %s327_s30 = scalar_lea.hbm %s504_s25, 512 }
  0x15   : > { %p328_p13 = scmp.ne.s32.totalorder %s504_s25, %s327_s30  ;;  %p329_p0 = pneg %p508_p12 }
  0x16   : > { %s332_s4 = scalar_lea.hbm %s606_s0, 2048  ;;  %p333_p3 = scmp.lt.u32.totalorder %s504_s25, %s606_s0 }
  0x17   : > { %p330_p1 = pnand %p329_p0, %p328_p13  ;;  %p334_p4 = scmp.lt.u32.totalorder %s332_s4, %s327_s30 }
  0x18   : > { %p336_p7 = scmp.lt.u32.totalorder %s327_s30, %s504_s25 }
  0x19   : > { %p331_p2 = pneg %p330_p1  ;;  %p335_p5 = por %p334_p4, %p333_p3 }
  0x1b   : > { %p337_p8 = por %p336_p7, %p335_p5 }
  0x1d   : > { %p338_p9 = pnand %p337_p8, %p331_p2 }
  0x1f   : > { %341 = shalt.err (!%p338_p9)
}
  0x20   : > { %s342_s13 = scalar_lea.vmem %s512_s27, 512  ;;  %s425_s14 = smov [#allocation2]  }
  0x21   : > { %p343_p13 = scmp.ne.s32.totalorder %s512_s27, %s342_s13  ;;  %s347_s16 = sshll.u32 %s425_s14, 4  ;;  %s348_s16 = int_to_ptr.vmem [resolvable:$false] %s347_s16 }
  0x22   : > { %s349_s20 = scalar_lea.vmem %s348_s16, 1024  ;;  %p350_p10 = scmp.lt.s32.totalorder %s512_s27, %s348_s16 }
  0x23   : > { %p345_p1 = pnand %p343_p13, %p329_p0  ;;  %p351_p3 = scmp.lt.s32.totalorder %s349_s20, %s342_s13 }
  0x25   : > { %p346_p11 = pneg %p345_p1  ;;  %p352_p4 = por %p351_p3, %p350_p10 }
  0x27   : > { %p353_p5 = pnand %p352_p4, %p346_p11 }
  0x29   : > { %356 = shalt.err (!%p353_p5)
}
  0x2a   : > { %s426_s21 = smov 128   ;;  %s427_s22 = smov 8  }
  0x2b   : > { %275 = dma.hbm_to_vmem [thread:$0]  (!%p508_p12), %s504_s25, 512, %s512_s27, %s514_s29, %s426_s21, %s426_s21, %s427_s22  }
  0x2c   : > { %p258_p0 = scmp.ge.s32.totalorder %s423_s9, 1  ;;  %p106_p2 = scmp.lt.s32.totalorder %s423_s9, 5 }
  0x2e   : > { %p107_p7 = pnand %p258_p0, %p106_p2 }
  0x2f   : > { %s545_s23 = sand.u32 (!%p107_p7), 1, %s415_s7  }
  0x30   : > { %110 = sbr.rel (%p107_p7) target bundleno = 207 (0xcf), region = 24  ;;  %s259_s24 = sshll.u32 (!%p107_p7), %s545_s23, 5 }
  0x31   : > { %s113_s26 = scalar_lea.sflag (!%p107_p7), [#allocation3], %s545_s23  ;;  %s116_s30 = scalar_lea.vmem (!%p107_p7), [#allocation2], %s259_s24 }
  0x37   : > { %402 = dma.done.wait (%p485_p6), %s113_s26, 512  }
  0x38   : > { %404 = vsyncadd (%p485_p6), %s113_s26, 4294966784  ;;  %v139_v0 = vld [vmem:[%s116_s30 + $0x10] sm:$0xff]  ;;  %v137_v1 = vld [vmem:[%s116_s30] sm:$0xff]  ;;  %s428_s25 = smov 3   ;;  %s267_s17 = sshll.u32 %s463_s10, 9 }
  0x39   : > { %v140_v2 = vld [vmem:[%s116_s30 + $0x18] sm:$0xff]  ;;  %v143_v3 = vmul.f32 1.5, %v139_v0  ;;  %v141_v4 = vmul.f32 1.5, %v137_v1  ;;  %v138_v6 = vld [vmem:[%s116_s30 + $0x8] sm:$0xff]  ;;  %s134_s27 = scalar_lea.vmem [#allocation5], %s259_s24  ;;  %s561_s3 = scalar_lea.hbm %s607_s1, %s267_s17 }
  0x3a   : > { %v144_v5 = vmul.f32 1.5, %v140_v2  ;;  %v142_v7 = vmul.f32 1.5, %v138_v6  ;;  %s179_s28 = sshll.u32 %s134_s27, 4  ;;  %s166_s10 = scalar_lea.sflag [#allocation4], %s545_s23  ;;  %s563_s28 = int_to_ptr.vmem [resolvable:$true] %s179_s28 }
  0x3b   : > { %v147_v8 = vadd.f32 0.25, %v143_v3  ;;  %v145_v9 = vadd.f32 0.25, %v141_v4  ;;  %s357_s4 = scalar_lea.vmem %s563_s28, 512  ;;  %p614_p10 = scmp.ne.s32.totalorder %s611_s18, 0 }
  0x3c   : > { %v148_v10 = vadd.f32 0.25, %v144_v5  ;;  %v146_v11 = vadd.f32 0.25, %v142_v7  ;;  %p358_p6 = scmp.ne.s32.totalorder %s563_s28, %s357_s4  ;;  %s429_s5 = smov [#allocation5]  }
  0x3d   : > { %153 = vrot.lane.b32.xlu1 %v147_v8, %s428_s25  ;;  %149 = vrot.lane.b32.xlu0 %v145_v9, %s428_s25  ;;  %s361_s11 = sshll.u32 %s429_s5, 4  ;;  %s362_s11 = int_to_ptr.vmem [resolvable:$false] %s361_s11 }
  0x3e   : > { %p359_p11 = pnand %p358_p6, %p614_p10  ;;  %s363_s13 = scalar_lea.vmem %s362_s11, 1024 }
  0x3f   : > { %p364_p8 = scmp.lt.s32.totalorder %s563_s28, %s362_s11  ;;  %p365_p9 = scmp.lt.s32.totalorder %s363_s13, %s357_s4 }
  0x40   : > { %p360_p12 = pneg %p359_p11 }
  0x41   : > { %155 = vrot.lane.b32.xlu1 %v148_v10, %s428_s25  ;;  %151 = vrot.lane.b32.xlu0 %v146_v11, %s428_s25  ;;  %p366_p13 = por %p365_p9, %p364_p8 }
  0x43   : > { %p367_p1 = pnand %p366_p13, %p360_p12 }
  0xaf   : > { %v154_v12 = vpop.permute.xlu1 %153  ;;  %v150_v13 = vpop.permute.xlu0 %149 }
  0xb0   : > { %319 = vtanh.f32 %v154_v12 }
  0xb1   : > { %321 = vtanh.f32 %v150_v13 }
  0xb3   : > { %v156_v14 = vpop.permute.xlu1 %155  ;;  %v152_v15 = vpop.permute.xlu0 %151 }
  0xb4   : > { %323 = vtanh.f32 %v156_v14 }
  0xb5   : > { %325 = vtanh.f32 %v152_v15 }
  0xba   : > { %v320_v16 = vpop.eup %319 }
  0xbb   : > { %v322_v17 = vpop.eup %321  ;;  %163 = vst [vmem:[%s134_s27 + $0x10] sm:$0xff] %v320_v16 }
  0xbc   : > { %161 = vst [vmem:[%s134_s27] sm:$0xff] %v322_v17 }
  0xbe   : > { %v324_v18 = vpop.eup %323 }
  0xbf   : > { %v326_v19 = vpop.eup %325  ;;  %164 = vst [vmem:[%s134_s27 + $0x18] sm:$0xff] %v324_v18 }
  0xc0   : > { %162 = vst [vmem:[%s134_s27 + $0x8] sm:$0xff] %v326_v19 }
  0xc1   : > { %370 = shalt.err (!%p367_p1)
}
  0xc2   : > { %s371_s14 = scalar_lea.hbm %s561_s3, 512  ;;  %s375_s21 = scalar_lea.hbm %s607_s1, 2048 }
  0xc3   : > { %p372_p3 = scmp.ne.s32.totalorder %s561_s3, %s371_s14  ;;  %p376_p0 = scmp.lt.u32.totalorder %s561_s3, %s607_s1 }
  0xc4   : > { %p377_p2 = scmp.lt.u32.totalorder %s375_s21, %s371_s14  ;;  %p379_p6 = scmp.lt.u32.totalorder %s371_s14, %s561_s3 }
  0xc5   : > { %p373_p4 = pnand %p372_p3, %p614_p10 }
  0xc6   : > { %p378_p7 = por %p377_p2, %p376_p0 }
  0xc7   : > { %p374_p5 = pneg %p373_p4 }
  0xc8   : > { %p380_p11 = por %p379_p6, %p378_p7 }
  0xca   : > { %p381_p12 = pnand %p380_p11, %p374_p5 }
  0xcc   : > { %384 = shalt.err (!%p381_p12)
}
  0xcd   : > { %s430_s26 = smov 128   ;;  %s431_s30 = smov 8  }
  0xce   : > { %270 = dma.vmem_to_hbm [thread:$0]  (%p614_p10), %s563_s28, 512, %s561_s3, %s166_s10, %s430_s26, %s430_s26, %s431_s30  }
  0xcf PF: > { %p281_p8 = scmp.ge.s32.totalorder %s423_s9, 2  ;;  %s194_s25 = sand.u32 1, %s411_s6  }
  0xd0   : > { %p615_p9 = scmp.ne.s32.totalorder %s612_s19, 0  ;;  %s195_s17 = scalar_lea.sflag [#allocation4], %s194_s25 }
  0xd2   : > { %p277_p13 = pnand %p281_p8, %p615_p9 }
  0xd4   : > { %406 = dma.done.wait (!%p277_p13), %s195_s17, 512  }
  0xd5   : > { %408 = vsyncadd (!%p277_p13), %s195_s17, 4294966784  ;;  %p14_p1 = scmp.ge.s32.totalorder %s467_s12, 6   ;;  %s616_s6 = smov %s415_s7 }
  0xd6   : > { %s617_s7 = smov %s419_s8  ;;  %s618_s8 = smov %s479_s15 }
  0xd7   : > { %s619_s9 = smov %s467_s12  ;;  %16 = sbr.rel (!%p14_p1) target bundleno = 5 (0x5), region = 69 }
  0xde   :  { %200 = vsyncpa [#allocation3], 1 }
  0xdf   :  { %202 = vsyncpa [#allocation3 + $0x1], 1 }
  0xe0   :  { %203 = vsyncpa [#allocation4], 1 }
  0xe1   :  { %205 = vsyncpa [#allocation4 + $0x1], 1 }

</bundles_post_ra>
